<compile_context>
chip_gen: v7x
topology: tpu7x:2x2x1
jax: 0.10.0
libtpu: 0.0.40
codegen_flags: <defaults>
</compile_context>

<pallas_src>
import jax
import jax.numpy as jnp
from jax.experimental import pallas as pl
from jax.experimental.pallas import tpu as pltpu

# ---- synthetic configuration (small, consistent with the module) -----------
N_CLS = 4          # number of class names
N_CTX = 8          # number of context tokens (module default would be 16)
SUF_LEN = 7        # suffix tokens after the context (EOS + class tokens + pad)
SEQ_LEN = 1 + N_CTX + SUF_LEN   # = 16 (stand-in for CLIP's 77)
CTX_DIM = 128      # ctx_dim (clip_model.ln_final.weight.shape[0])
DTYPE = jnp.float32  # clip_model.dtype; use bf16/fp16 at real scale to halve HBM traffic


def prompt_cat_kernel(prefix_ref, ctx_ref, suffix_ref, out_ref):
    # prefix_ref: (BC, 1, D)       -- token_prefix chunk (BC classes)
    # ctx_ref:    (N_CTX, D)       -- shared (generic) learned context, resident
    # suffix_ref: (BC, SUF_LEN, D) -- token_suffix chunk
    # out_ref:    (BC, SEQ_LEN, D) -- prompts chunk
    bc, _, d = out_ref.shape
    n_ctx = ctx_ref.shape[0]
    # Broadcast the shared context across this chunk's classes and build the whole
    # (BC, SEQ_LEN, D) slab in registers, then issue a single unmasked full-tile
    # store (no sublane-shifted vst.msk partial writes).
    ctx_b = jnp.broadcast_to(ctx_ref[...][None, :, :], (bc, n_ctx, d))
    out_ref[...] = jnp.concatenate([prefix_ref[...], ctx_b, suffix_ref[...]], axis=1)


def prompt_learner_forward(token_prefix, ctx, token_suffix, *, class_block=None):
    """Pallas equivalent of PromptLearner.forward() with position == 'end'.

    token_prefix: (n_cls, 1, D)
    ctx:          (n_ctx, D)        (generic context; broadcast across classes)
    token_suffix: (n_cls, suf_len, D)
    returns:      (n_cls, 1 + n_ctx + suf_len, D)
    """
    n_cls, pre_len, d = token_prefix.shape
    n_ctx, d_ctx = ctx.shape
    suf_len = token_suffix.shape[1]
    assert d_ctx == d and token_suffix.shape[2] == d
    seq_len = pre_len + n_ctx + suf_len
    itemsize = jnp.dtype(token_prefix.dtype).itemsize

    if class_block is None:
        # As many classes per grid step as possible while
        #  (a) keeping >= 2 grid steps so ("parallel",) semantics can shard the
        #      grid across v7x's two TensorCores, and
        #  (b) staying well under the scoped-VMEM default (16/32 MiB) once the
        #      pipeline double-buffers each input/output block.
        vmem_budget = 8 * 1024 * 1024
        per_cls_bytes = 2 * (pre_len + suf_len + seq_len) * d * itemsize
        class_block = max(
            1,
            min(n_cls // 2 if n_cls >= 2 else 1,
                vmem_budget // max(per_cls_bytes, 1)),
        )
    # class_block must evenly divide n_cls (this simple kernel does no masking).
    while n_cls % class_block:
        class_block -= 1

    grid = (n_cls // class_block,)
    return pl.pallas_call(
        prompt_cat_kernel,
        out_shape=jax.ShapeDtypeStruct((n_cls, seq_len, d), token_prefix.dtype),
        grid_spec=pltpu.PrefetchScalarGridSpec(
            num_scalar_prefetch=0,
            grid=grid,
            in_specs=[
                pl.BlockSpec((class_block, pre_len, d), lambda i: (i, 0, 0)),
                # Constant block index: ctx is DMA'd once and stays VMEM-resident
                # across all class chunks.
                pl.BlockSpec((n_ctx, d), lambda i: (0, 0)),
                pl.BlockSpec((class_block, suf_len, d), lambda i: (i, 0, 0)),
            ],
            out_specs=pl.BlockSpec((class_block, seq_len, d), lambda i: (i, 0, 0)),
        ),
        compiler_params=pltpu.CompilerParams(
            dimension_semantics=("parallel",),
            # At real CLIP sizes (n_cls ~100s, seq 77, D 512+), raise the scoped
            # VMEM limit here if a larger class_block is desired:
            # vmem_limit_bytes=64 * 1024 * 1024,
        ),
    )(token_prefix, ctx, token_suffix)


if __name__ == "__main__":
    key = jax.random.PRNGKey(0)
    k_ctx, k_emb = jax.random.split(key)

    # ctx_vectors: nn.init.normal_(std=0.02), shape (n_ctx, ctx_dim) (generic context)
    ctx = (0.02 * jax.random.normal(k_ctx, (N_CTX, CTX_DIM))).astype(DTYPE)

    # Synthetic stand-in for clip_model.token_embedding(tokenized_prompts):
    # full embedding of shape (n_cls, SEQ_LEN, ctx_dim); prefix/suffix buffers
    # are slices of it exactly as in __init__.
    embedding = jax.random.normal(k_emb, (N_CLS, SEQ_LEN, CTX_DIM)).astype(DTYPE)
    token_prefix = embedding[:, :1, :]                 # (n_cls, 1, D)
    token_suffix = embedding[:, 1 + N_CTX:, :]         # (n_cls, SUF_LEN, D)

    prompts = prompt_learner_forward(token_prefix, ctx, token_suffix)
    prompts = jax.block_until_ready(prompts)

    # Pure-JAX reference of the forward pass (broadcast + concat on axis=1).
    ctx_b = jnp.broadcast_to(ctx[None], (N_CLS, N_CTX, CTX_DIM))
    ref = jnp.concatenate([token_prefix, ctx_b, token_suffix], axis=1)

    assert prompts.shape == (N_CLS, SEQ_LEN, CTX_DIM)
    assert prompts.dtype == DTYPE
    assert jnp.allclose(prompts, ref), "mismatch vs reference"

    print("KERNEL_OK")
</pallas_src>

<mosaic_0001>
module attributes {stable_mosaic.version = 11 : i64} {
  func.func @prompt_cat_kernel(%arg0: i32, %arg1: memref<2x1x128xf32, #tpu.memory_space<vmem>>, %arg2: memref<8x128xf32, #tpu.memory_space<vmem>>, %arg3: memref<2x7x128xf32, #tpu.memory_space<vmem>>, %arg4: memref<2x16x128xf32, #tpu.memory_space<vmem>>) attributes {dimension_semantics = [#tpu.dimension_semantics<parallel>], iteration_bounds = array<i64: 2>, scalar_prefetch = 0 : i64, scratch_operands = 0 : i64, tpu.core_type = #tpu.core_type<tc>, window_params = [{transform_indices = @transform_0, window_bounds = array<i64: 2, 1, 128>}, {pipeline_mode = #tpu.pipeline_mode<synchronous>, transform_indices = @transform_1, window_bounds = array<i64: 8, 128>}, {transform_indices = @transform_2, window_bounds = array<i64: 2, 7, 128>}, {transform_indices = @transform_3, window_bounds = array<i64: 2, 16, 128>}]} {
    %c0 = arith.constant 0 : index
    %c0_0 = arith.constant 0 : index
    %0 = vector.load %arg2[%c0, %c0_0] : memref<8x128xf32, #tpu.memory_space<vmem>>, vector<8x128xf32>
    %1 = vector.shape_cast %0 : vector<8x128xf32> to vector<1x8x128xf32>
    %2 = vector.shape_cast %1 : vector<1x8x128xf32> to vector<1x8x128xf32>
    %3 = vector.broadcast %2 : vector<1x8x128xf32> to vector<2x8x128xf32>
    %c0_1 = arith.constant 0 : index
    %c0_2 = arith.constant 0 : index
    %c0_3 = arith.constant 0 : index
    %4 = vector.load %arg1[%c0_1, %c0_2, %c0_3] : memref<2x1x128xf32, #tpu.memory_space<vmem>>, vector<2x1x128xf32>
    %c0_4 = arith.constant 0 : index
    %c0_5 = arith.constant 0 : index
    %c0_6 = arith.constant 0 : index
    %5 = vector.load %arg3[%c0_4, %c0_5, %c0_6] : memref<2x7x128xf32, #tpu.memory_space<vmem>>, vector<2x7x128xf32>
    %6 = tpu.concatenate %4, %3, %5 in 1 : vector<2x1x128xf32>, vector<2x8x128xf32>, vector<2x7x128xf32> -> vector<2x16x128xf32>
    %c0_7 = arith.constant 0 : index
    %c0_8 = arith.constant 0 : index
    %c0_9 = arith.constant 0 : index
    %7 = vector.load %arg4[%c0_7, %c0_8, %c0_9] : memref<2x16x128xf32, #tpu.memory_space<vmem>>, vector<2x16x128xf32>
    tpu.vector_store %arg4[%c0_7, %c0_8, %c0_9], %6 {strides = array<i32>} : memref<2x16x128xf32, #tpu.memory_space<vmem>>, vector<2x16x128xf32>,
    return
  }
  func.func @transform_0(%arg0: i32) -> (i32, i32, i32) {
    %c0_i32 = arith.constant 0 : i32
    %c0_i32_0 = arith.constant 0 : i32
    %c0_i32_1 = arith.constant 0 : i32
    return %arg0, %c0_i32, %c0_i32_0 : i32, i32, i32
  }
  func.func @transform_1(%arg0: i32) -> (i32, i32) {
    %c0_i32 = arith.constant 0 : i32
    %c0_i32_0 = arith.constant 0 : i32
    %c0_i32_1 = arith.constant 0 : i32
    return %c0_i32, %c0_i32_0 : i32, i32
  }
  func.func @transform_2(%arg0: i32) -> (i32, i32, i32) {
    %c0_i32 = arith.constant 0 : i32
    %c0_i32_0 = arith.constant 0 : i32
    %c0_i32_1 = arith.constant 0 : i32
    return %arg0, %c0_i32, %c0_i32_0 : i32, i32, i32
  }
  func.func @transform_3(%arg0: i32) -> (i32, i32, i32) {
    %c0_i32 = arith.constant 0 : i32
    %c0_i32_0 = arith.constant 0 : i32
    %c0_i32_1 = arith.constant 0 : i32
    return %arg0, %c0_i32, %c0_i32_0 : i32, i32, i32
  }
}

</mosaic_0001>

<bundles_post_ra>
// kernel: tpu_custom_call.1
= control target key start
LH: loop header
LB: loop body
LE: loop exit
PB: predicated region body
PF: predicated region fallthrough
CT: control target
= control target key end

     0   :  { %8 = vsyncpa [#allocation3], 0  ;;  %s560_s0 = inlined_call_operand.vmem [shape: f32[4,1,128], index: 0, kind: input, shape index: {}]   ;;  %s561_s1 = inlined_call_operand.vmem [shape: f32[8,128], index: 1, kind: input, shape index: {}]   ;;  %s562_s2 = inlined_call_operand.vmem [shape: f32[4,7,128], index: 2, kind: input, shape index: {}]   ;;  %s563_s3 = inlined_call_operand.hbm [shape: f32[4,16,128], index: 3, kind: output, shape index: {}]  }
   0x1   :  { %10 = vsyncpa [#allocation3 + $0x1], 0  ;;  %s444_s12 = smov 0   ;;  %s446_s13 = smov 0  }
   0x2   :  { %s448_s14 = smov 0   ;;  %s450_s15 = smov 0  }
   0x3 LB: > { %s465_s16 = sadd.s32 4294967295, %s419_s15   ;;  %s300_s17 = sadd.s32 4294967294, %s419_s15   ;;  %s419_s15 = sphi %s450_s15, %s569_s15   ;;  %s415_s14 = sphi %s448_s14, %s568_s14   ;;  %s411_s13 = sphi %s446_s13, %s567_s13   ;;  %s407_s12 = sphi %s444_s12, %s566_s12  }
   0x4   : > { %s469_s18 = sadd.s32 1, %s419_s15   ;;  %s96_s19 = sadd.s32 1, %s415_s14 }
   0x5   : > { %s93_s20 = ssub.s32 %s419_s15, %s469_s18  ;;  %p106_p0 = scmp.ne.s32.totalorder %s415_s14, %s411_s13 }
   0x6   : > { %p94_p1 = scmp.eq.s32.totalorder %s93_s20, 0  ;;  %p107_p2 = scmp.eq.s32.totalorder %s465_s16, 1 }
   0x7   : > { %p112_p3 = scmp.ne.s32.totalorder %s411_s13, %s407_s12  ;;  %p113_p4 = scmp.eq.s32.totalorder %s300_s17, 1 }
   0x8   : > { %s480_s21 = scalar_select %p94_p1, %s415_s14, %s96_s19  }
   0x9   : > { %p482_p5 = por %p107_p2, %p106_p0  ;;  %p486_p6 = por %p113_p4, %p112_p3 }
   0xa   : > { %p303_p7 = scmp.ge.s32.totalorder %s419_s15, 1  ;;  %p151_p8 = scmp.lt.s32.totalorder %s419_s15, 3 }
   0xc   : > { %p152_p9 = pnand %p303_p7, %p151_p8 }
   0xd   : > { %s176_s24 = sand.u32 (!%p152_p9), 1, %s411_s13   ;;  %s305_s25 = sshll.u32 (!%p152_p9), %s465_s16, 1  ;;  %v191_v0 = vld [vmem:[%s561_s1] sm:$0xff] (!%p152_p9)  ;;  %vm205_vm0 = vcmask (!%p152_p9), 1040384  }
   0xe   : > { %155 = sbr.rel (%p152_p9) target bundleno = 46 (0x2e), region = 32  ;;  %s304_s28 = sshll.u32 (!%p152_p9), %s176_s24, 5  ;;  %v197_v1 = vrot.slane (!%p152_p9), %v191_v0, 7 }
   0xf   : > { %p180_p10 = scmp.lt.s32.totalorder (!%p152_p9), %s305_s25, 3  ;;  %s178_s5 = scalar_lea.vmem (!%p152_p9), [#allocation2], %s304_s28 }
  0x10   : > { %s229_s6 = sshll.u32 (!%p152_p9), %s178_s5, 4  ;;  %s315_s8 = sshll.u32 (!%p152_p9), %s465_s16, 9  ;;  %s508_s6 = int_to_ptr.vmem [resolvable:$true] %s229_s6 }
  0x11   : > { %s513_s19 = scalar_lea.hbm (!%p152_p9), %s563_s3, %s315_s8  ;;  %s519_s20 = scalar_lea.sflag (!%p152_p9), [#allocation3], %s176_s24 }
  0x12   : > { %s421_s26 = smov (!%p152_p9), [#allocation2]  }
  0x13   : > { %s361_s27 = sshll.u32 (!%p152_p9), %s421_s26, 4  ;;  %s362_s27 = int_to_ptr.vmem [resolvable:$false] %s361_s27 }
  0x14   : > { %s363_s28 = scalar_lea.vmem (!%p152_p9), %s362_s27, 1024  ;;  %p364_p0 = scmp.lt.s32.totalorder (!%p152_p9), %s508_s6, %s362_s27 }
  0x15   : > { %s571_s25 = smov (!%p180_p10, %s305_s25), 3 }
  0x16   : > { %s182_s4 = scalar_lea.vmem %s560_s0, %s571_s25  ;;  %s307_s7 = sshll.u32 %s571_s25, 3 }
  0x17   : > { %v192_v2 = vld [vmem:[%s182_s4] sm:$0x1]  ;;  %v193_v3 = vld [vmem:[%s182_s4 + $0x1] sm:$0x1]  ;;  %s188_s11 = scalar_lea.vmem %s562_s2, %s307_s7  ;;  %s357_s25 = scalar_lea.vmem %s508_s6, 512 }
  0x18   : > { %v206_v4 = vsel %vm205_vm0, %v192_v2, %v197_v1  ;;  %v207_v5 = vsel %vm205_vm0, %v193_v3, %v197_v1  ;;  %v194_v6 = vld [vmem:[%s188_s11] sm:$0x7f]  ;;  %v195_v7 = vld [vmem:[%s188_s11 + $0x8] sm:$0x7f]  ;;  %p358_p11 = scmp.ne.s32.totalorder %s508_s6, %s357_s25  ;;  %p365_p1 = scmp.lt.s32.totalorder %s363_s28, %s357_s25 }
  0x19   : > { %210 = vst [vmem:[%s178_s5] sm:$0xff] %v206_v4  ;;  %212 = vst [vmem:[%s178_s5 + $0x10] sm:$0xff] %v207_v5  ;;  %v201_v8 = vrot.slane %v194_v6, 7  ;;  %v202_v9 = vrot.slane %v195_v7, 7 }
  0x1a   : > { %p359_p12 = pnand %p358_p11, %p482_p5  ;;  %p366_p2 = por %p365_p1, %p364_p0 }
  0x1b   : > { %v208_v10 = vsel %vm205_vm0, %v197_v1, %v201_v8  ;;  %v209_v11 = vsel %vm205_vm0, %v197_v1, %v202_v9 }
  0x1c   : > { %211 = vst [vmem:[%s178_s5 + $0x8] sm:$0xff] %v208_v10  ;;  %213 = vst [vmem:[%s178_s5 + $0x18] sm:$0xff] %v209_v11  ;;  %p360_p13 = pneg %p359_p12 }
  0x1e   : > { %p367_p3 = pnand %p366_p2, %p360_p13 }
  0x20   : > { %370 = shalt.err (!%p367_p3)
}
  0x21   : > { %s371_s24 = scalar_lea.hbm %s513_s19, 512  ;;  %s375_s4 = scalar_lea.hbm %s563_s3, 1024 }
  0x22   : > { %p372_p4 = scmp.ne.s32.totalorder %s513_s19, %s371_s24  ;;  %p376_p9 = scmp.lt.u32.totalorder %s513_s19, %s563_s3 }
  0x23   : > { %p377_p10 = scmp.lt.u32.totalorder %s375_s4, %s371_s24  ;;  %p379_p12 = scmp.lt.u32.totalorder %s371_s24, %s513_s19 }
  0x24   : > { %p373_p7 = pnand %p372_p4, %p482_p5 }
  0x25   : > { %p378_p11 = por %p377_p10, %p376_p9 }
  0x26   : > { %p374_p8 = pneg %p373_p7 }
  0x27   : > { %p380_p13 = por %p379_p12, %p378_p11 }
  0x29   : > { %p381_p0 = pnand %p380_p13, %p374_p8 }
  0x2b   : > { %384 = shalt.err (!%p381_p0)
}
  0x2c   : > { %s422_s8 = smov 128   ;;  %s423_s9 = smov 8  }
  0x2d   : > { %316 = dma.vmem_to_hbm [thread:$0]  (%p482_p5), %s508_s6, 512, %s513_s19, %s519_s20, %s422_s8, %s422_s8, %s423_s9  }
  0x2e PF: > { %p322_p1 = scmp.ge.s32.totalorder %s419_s15, 2  ;;  %s244_s10 = sand.u32 1, %s407_s12  }
  0x2f   : > { %s245_s11 = scalar_lea.sflag [#allocation3], %s244_s10 }
  0x30   : > { %p319_p2 = pnand %p322_p1, %p486_p6 }
  0x32   : > { %402 = dma.done.wait (!%p319_p2), %s245_s11, 512  }
  0x33   : > { %404 = vsyncadd (!%p319_p2), %s245_s11, 4294966784  ;;  %p13_p3 = scmp.ge.s32.totalorder %s469_s18, 4   ;;  %s566_s12 = smov %s411_s13 }
  0x34   : > { %s567_s13 = smov %s415_s14  ;;  %s568_s14 = smov %s480_s21 }
  0x35   : > { %s569_s15 = smov %s469_s18  ;;  %15 = sbr.rel (!%p13_p3) target bundleno = 3 (0x3), region = 70 }
  0x3c   :  { %250 = vsyncpa [#allocation3], 1 }
  0x3d   :  { %252 = vsyncpa [#allocation3 + $0x1], 1 }

</bundles_post_ra>
